<compile_context>
chip_gen: v6e
topology: v6e:2x2x1
jax: 0.10.0
libtpu: 0.0.40
codegen_flags: <defaults>
</compile_context>

<pallas_src>
import functools

import jax
import jax.numpy as jnp
from jax.experimental import pallas as pl
from jax.experimental.pallas import tpu as pltpu


_LANE = 128     # TPU lane width: stored column slabs kept multiples of this
_SUBLANE = 8    # f32 sublane height


def _round_up(x, m):
    return ((x + m - 1) // m) * m


@functools.lru_cache(maxsize=1)
def _vmem_capacity_bytes():
    try:
        return int(pltpu.get_tpu_info().vmem_capacity_bytes)
    except Exception:
        return 64 * 1024 * 1024   # conservative: v7x per-TensorCore VMEM


# ----------------------------------------------------------------------------
# Fused Pallas kernel: one batch tile of  act(x @ W_all + b_all)  for all heads
# ----------------------------------------------------------------------------
def _fused_heads_kernel(x_ref, w_ref, b_ref, o_ref, *, bin_start, o_pad):
    # x_ref : (block_m, D)
    # w_ref : (D, O_pad)   -- all heads' weights, lane-padded, resident
    # b_ref : (1, O_pad)   -- resident
    # o_ref : (block_m, O_pad)
    # Columns [0, bin_start)      : categorical logits / numerical values (raw)
    # Columns [bin_start, O_pad)  : binary heads (+ padding) -> exact sigmoid
    y = jnp.dot(x_ref[...], w_ref[...], preferred_element_type=jnp.float32)
    y = y + b_ref[...]                               # broadcast (1, O_pad)

    if bin_start > 0:
        # Linear heads: raw affine output, lane-aligned full-width store.
        o_ref[:, :bin_start] = y[:, :bin_start].astype(o_ref.dtype)
    if bin_start < o_pad:
        # Binary heads: exact sigmoid restricted to the lane-aligned slab.
        z = y[:, bin_start:]
        o_ref[:, bin_start:] = (1.0 / (1.0 + jnp.exp(-z))).astype(o_ref.dtype)


def _choose_block_m(batch, d, o_pad, vmem_budget_bytes):
    """Largest MXU-aligned batch tile that fits the VMEM budget.

    Keeps >=2 grid steps when batch > 128 so the 'parallel' axis can shard
    across both v7x TensorCores.
    """
    if batch <= _LANE:
        # Single tile; block second-to-last dim equals the full array dim,
        # which is always a legal block shape.
        return batch

    d_pad = _round_up(d, _LANE)          # x's D is lane-padded in VMEM

    def vmem_need(bm):
        # double-buffered x tile + double-buffered out tile
        # + double-buffered resident W and b
        return 4 * (2 * bm * d_pad + 2 * bm * o_pad + 2 * d * o_pad + 4 * o_pad)

    for bm in (2048, 1024, 512, 256, 128):
        if bm < batch and vmem_need(bm) <= vmem_budget_bytes:
            return bm
    return _LANE


def fused_decoder_matmul(x, w_all, b_all, *, bin_start):
    """act(x @ w_all + b_all) with sigmoid on the binary slab, one pallas_call."""
    B, D = x.shape
    Dw, O_pad = w_all.shape
    assert D == Dw
    assert O_pad % _LANE == 0, "fused output width must be lane-padded"
    assert bin_start % _LANE == 0 or bin_start == 0

    vmem_cap = _vmem_capacity_bytes()
    block_m = _choose_block_m(B, D, O_pad, int(0.4 * vmem_cap))
    grid_m = pl.cdiv(B, block_m)
    vmem_limit = min(int(0.75 * vmem_cap), 96 * 1024 * 1024)

    kernel = functools.partial(_fused_heads_kernel,
                               bin_start=bin_start, o_pad=O_pad)

    return pl.pallas_call(
        kernel,
        out_shape=jax.ShapeDtypeStruct((B, O_pad), jnp.float32),
        grid_spec=pltpu.PrefetchScalarGridSpec(
            num_scalar_prefetch=0,
            grid=(grid_m,),                                   # ragged last block OK
            in_specs=[
                pl.BlockSpec((block_m, D), lambda i: (i, 0)),  # x tile
                pl.BlockSpec((D, O_pad), lambda i: (0, 0)),    # resident W
                pl.BlockSpec((1, O_pad), lambda i: (0, 0)),    # resident b
            ],
            out_specs=pl.BlockSpec((block_m, O_pad), lambda i: (i, 0)),
        ),
        compiler_params=pltpu.CompilerParams(
            dimension_semantics=("parallel",),   # batch tiles independent (v7x megacore)
            vmem_limit_bytes=vmem_limit,
        ),
    )(x, w_all, b_all)


# ----------------------------------------------------------------------------
# Jitted forward: fused kernel + per-attribute column slicing (static metadata)
# ----------------------------------------------------------------------------
def _decoder_forward(x, w_all, b_all, *, slices, bin_start):
    fused = fused_decoder_matmul(x, w_all, b_all, bin_start=bin_start)
    return {attr: fused[:, start:start + size]
            for attr, start, size, _kind in slices}


# ----------------------------------------------------------------------------
# Decoder: per-attribute heads, parameters built deterministically in-script,
# concatenated once into the fused (lane-padded) weight/bias tensors.
# ----------------------------------------------------------------------------
class Decoder:
    def __init__(self, input_variables_dict, input_dim=32, key=None):
        if key is None:
            key = jax.random.PRNGKey(0)
        self.input_dim = input_dim
        self.heads = {}    # attr -> {"w": (D, O), "b": (1, O), "kind": str}

        kinds, dims = {}, {}
        for attr, params in input_variables_dict.items():
            t = params["type"]
            if t == "categorical":
                out_dim, kind = int(params["size"]), "categorical"
            elif t == "binary":
                out_dim, kind = 1, "binary"
            elif t == "numerical":
                out_dim, kind = 1, "numerical"
            else:
                raise NotImplementedError("Unsupported attribute type %s" % t)

            key, kw, kb = jax.random.split(key, 3)
            bound = 1.0 / float(input_dim) ** 0.5   # torch.nn.Linear init
            w = jax.random.uniform(kw, (input_dim, out_dim), jnp.float32,
                                   -bound, bound)
            b = jax.random.uniform(kb, (1, out_dim), jnp.float32,
                                   -bound, bound)
            self.heads[attr] = {"w": w, "b": b, "kind": kind}
            kinds[attr], dims[attr] = kind, out_dim

        # Column layout: non-binary heads first, binary heads in a separate
        # lane-aligned slab so the in-kernel sigmoid is a static slice.
        col_map = {}
        off = 0
        for attr in input_variables_dict:
            if kinds[attr] != "binary":
                col_map[attr] = (off, dims[attr], kinds[attr])
                off += dims[attr]
        o_lin = off
        n_bin = sum(dims[a] for a in input_variables_dict if kinds[a] == "binary")
        bin_start = _round_up(o_lin, _LANE) if (n_bin > 0 and o_lin > 0) else 0
        off = bin_start
        for attr in input_variables_dict:
            if kinds[attr] == "binary":
                col_map[attr] = (off, dims[attr], kinds[attr])
                off += dims[attr]
        o_total = max(off, o_lin)
        o_pad = max(_LANE, _round_up(o_total, _LANE))
        if n_bin == 0:
            bin_start = o_pad        # no sigmoid slab
        # NOTE: for tiny decoders (few real columns) the lane padding writes
        # more bytes than the useful output; acceptable at this size.

        w_all = jnp.zeros((input_dim, o_pad), jnp.float32)
        b_all = jnp.zeros((1, o_pad), jnp.float32)
        for attr, (start, size, _kind) in col_map.items():
            w_all = w_all.at[:, start:start + size].set(self.heads[attr]["w"])
            b_all = b_all.at[:, start:start + size].set(self.heads[attr]["b"])

        self.w_all = w_all
        self.b_all = b_all
        self.bin_start = bin_start
        self.o_pad = o_pad
        # Per-attribute slices in original dict order (matches torch forward).
        self.slices = tuple((attr, *col_map[attr]) for attr in input_variables_dict)

        # One jitted program for the whole decoder forward.
        self._forward = jax.jit(functools.partial(
            _decoder_forward, slices=self.slices, bin_start=bin_start))

    def __call__(self, x):
        return self._forward(x, self.w_all, self.b_all)


# ----------------------------------------------------------------------------
# Reference (pure JAX) for correctness checking.
# ----------------------------------------------------------------------------
def _reference(decoder, x):
    out = {}
    for attr, head in decoder.heads.items():
        y = x @ head["w"] + head["b"]
        if head["kind"] == "binary":
            y = jax.nn.sigmoid(y)
        out[attr] = y
    return out


if __name__ == "__main__":
    input_variables_dict = {
        "color": {"type": "categorical", "size": 6},
        "is_active": {"type": "binary"},
        "price": {"type": "numerical"},
    }
    input_dim = 32
    batch = 8

    key = jax.random.PRNGKey(0)
    key_x, key_params = jax.random.split(key)
    x = jax.random.normal(key_x, (batch, input_dim), jnp.float32)

    decoder = Decoder(input_variables_dict, input_dim=input_dim, key=key_params)

    decoded = decoder(x)
    decoded = jax.tree_util.tree_map(jax.block_until_ready, decoded)

    ref = _reference(decoder, x)
    for attr, start, size, kind in decoder.slices:
        assert decoded[attr].shape == ref[attr].shape, attr
        assert jnp.allclose(decoded[attr], ref[attr], atol=1e-5, rtol=1e-5), attr

    print("KERNEL_OK")
</pallas_src>

<mosaic_0001>
module attributes {stable_mosaic.version = 11 : i64} {
  func.func @_fused_heads_kernel(%arg0: i32, %arg1: memref<8x32xf32, #tpu.memory_space<vmem>>, %arg2: memref<32x256xf32, #tpu.memory_space<vmem>>, %arg3: memref<1x256xf32, #tpu.memory_space<vmem>>, %arg4: memref<8x256xf32, #tpu.memory_space<vmem>>) attributes {dimension_semantics = [#tpu.dimension_semantics<parallel>], iteration_bounds = array<i64: 1>, scalar_prefetch = 0 : i64, scratch_operands = 0 : i64, tpu.core_type = #tpu.core_type<tc>, window_params = [{transform_indices = @transform_0, window_bounds = array<i64: 8, 32>}, {pipeline_mode = #tpu.pipeline_mode<synchronous>, transform_indices = @transform_1, window_bounds = array<i64: 32, 256>}, {pipeline_mode = #tpu.pipeline_mode<synchronous>, transform_indices = @transform_2, window_bounds = array<i64: 1, 256>}, {transform_indices = @transform_3, window_bounds = array<i64: 8, 256>}]} {
    %c0 = arith.constant 0 : index
    %c0_0 = arith.constant 0 : index
    %0 = vector.load %arg1[%c0, %c0_0] : memref<8x32xf32, #tpu.memory_space<vmem>>, vector<8x32xf32>
    %c0_1 = arith.constant 0 : index
    %c0_2 = arith.constant 0 : index
    %1 = vector.load %arg2[%c0_1, %c0_2] : memref<32x256xf32, #tpu.memory_space<vmem>>, vector<32x256xf32>
    %cst = arith.constant dense<0.000000e+00> : vector<8x256xf32>
    %2 = tpu.matmul %0, %1, %cst {dimension_numbers = #tpu.dot_dimension_numbers<[1], [0], [0], [1], [0, 0, 1, 1], [], []>} : vector<8x32xf32>, vector<32x256xf32>, vector<8x256xf32> -> vector<8x256xf32>
    %c0_3 = arith.constant 0 : index
    %c0_4 = arith.constant 0 : index
    %3 = vector.load %arg3[%c0_3, %c0_4] : memref<1x256xf32, #tpu.memory_space<vmem>>, vector<1x256xf32>
    %4 = vector.broadcast %3 : vector<1x256xf32> to vector<8x256xf32>
    %5 = arith.addf %2, %4 : vector<8x256xf32>
    %6 = vector.extract_strided_slice %5 {offsets = [0, 0], sizes = [8, 128], strides = [1, 1]} : vector<8x256xf32> to vector<8x128xf32>
    %c0_5 = arith.constant 0 : index
    %c0_6 = arith.constant 0 : index
    %7 = vector.load %arg4[%c0_5, %c0_6] : memref<8x256xf32, #tpu.memory_space<vmem>>, vector<8x128xf32>
    tpu.vector_store %arg4[%c0_5, %c0_6], %6 {strides = array<i32>} : memref<8x256xf32, #tpu.memory_space<vmem>>, vector<8x128xf32>,
    %8 = vector.extract_strided_slice %5 {offsets = [0, 128], sizes = [8, 128], strides = [1, 1]} : vector<8x256xf32> to vector<8x128xf32>
    %cst_7 = arith.constant 0.000000e+00 : f32
    %9 = vector.broadcast %cst_7 : f32 to vector<8x128xf32>
    %10 = arith.subf %9, %8 : vector<8x128xf32>
    %11 = math.exp %10 : vector<8x128xf32>
    %cst_8 = arith.constant 1.000000e+00 : f32
    %12 = vector.broadcast %cst_8 : f32 to vector<8x128xf32>
    %13 = arith.addf %12, %11 : vector<8x128xf32>
    %cst_9 = arith.constant 1.000000e+00 : f32
    %14 = vector.broadcast %cst_9 : f32 to vector<8x128xf32>
    %15 = arith.divf %14, %13 : vector<8x128xf32>
    %c0_10 = arith.constant 0 : index
    %c128 = arith.constant 128 : index
    %16 = vector.load %arg4[%c0_10, %c128] : memref<8x256xf32, #tpu.memory_space<vmem>>, vector<8x128xf32>
    tpu.vector_store %arg4[%c0_10, %c128], %15 {strides = array<i32>} : memref<8x256xf32, #tpu.memory_space<vmem>>, vector<8x128xf32>,
    return
  }
  func.func @transform_0(%arg0: i32) -> (i32, i32) {
    %c0_i32 = arith.constant 0 : i32
    %c0_i32_0 = arith.constant 0 : i32
    return %arg0, %c0_i32 : i32, i32
  }
  func.func @transform_1(%arg0: i32) -> (i32, i32) {
    %c0_i32 = arith.constant 0 : i32
    %c0_i32_0 = arith.constant 0 : i32
    %c0_i32_1 = arith.constant 0 : i32
    return %c0_i32, %c0_i32_0 : i32, i32
  }
  func.func @transform_2(%arg0: i32) -> (i32, i32) {
    %c0_i32 = arith.constant 0 : i32
    %c0_i32_0 = arith.constant 0 : i32
    %c0_i32_1 = arith.constant 0 : i32
    return %c0_i32, %c0_i32_0 : i32, i32
  }
  func.func @transform_3(%arg0: i32) -> (i32, i32) {
    %c0_i32 = arith.constant 0 : i32
    %c0_i32_0 = arith.constant 0 : i32
    return %arg0, %c0_i32 : i32, i32
  }
}

</mosaic_0001>

<bundles_post_ra>
// kernel: _decoder_forward.1
= control target key start
LH: loop header
LB: loop body
LE: loop exit
PB: predicated region body
PF: predicated region fallthrough
CT: control target
= control target key end

     0   :  { %8 = vsyncpa [#allocation3], 0  ;;  %s244_s0 = inlined_call_operand.hbm [shape: f32[8,32], index: 0, kind: input, shape index: {}]   ;;  %s245_s1 = inlined_call_operand.hbm [shape: f32[32,256], index: 1, kind: input, shape index: {}]   ;;  %s246_s2 = inlined_call_operand.vmem [shape: f32[1,256], index: 2, kind: input, shape index: {}]   ;;  %s247_s3 = inlined_call_operand.vmem [shape: f32[8,256], index: 3, kind: output, shape index: {}]  }
   0x1   :  { %9 = vsyncpa [#allocation5], 0  ;;  %s204_s12 = smov [#allocation2]   ;;  %s205_s14 = smov [#allocation4]  }
   0x2   :  { %s16_s13 = sshll.u32 %s204_s12, 4  ;;  %s25_s15 = sshll.u32 %s205_s14, 4  ;;  %s17_s13 = int_to_ptr.vmem [resolvable:$true] %s16_s13  ;;  %s26_s15 = int_to_ptr.vmem [resolvable:$true] %s25_s15 }
   0x3   :  { %s168_s16 = scalar_lea.vmem %s17_s13, 128  ;;  %p173_p1 = scmp.lt.s32.totalorder %s17_s13, %s17_s13 }
   0x4   :  { %p169_p0 = scmp.ne.s32.totalorder %s17_s13, %s168_s16  ;;  %p174_p2 = scmp.lt.s32.totalorder %s168_s16, %s168_s16 }
   0x6   :  { %p175_p3 = por %p174_p2, %p173_p1 }
   0x8   :  { %p176_p4 = pnand %p175_p3, %p169_p0 }
   0xa   :  { %179 = shalt.err (!%p176_p4)
}
   0xb   :  { %19 = dma.hbm_to_vmem [thread:$0]  %s244_s0, 128, %s17_s13, [#allocation3]  }
   0xc   :  { %s188_s19 = scalar_lea.vmem %s26_s15, 1024  ;;  %p193_p6 = scmp.lt.s32.totalorder %s26_s15, %s26_s15 }
   0xd   :  { %p189_p5 = scmp.ne.s32.totalorder %s26_s15, %s188_s19  ;;  %p194_p7 = scmp.lt.s32.totalorder %s188_s19, %s188_s19 }
   0xf   :  { %p195_p8 = por %p194_p7, %p193_p6 }
  0x11   :  { %p196_p9 = pnand %p195_p8, %p189_p5 }
  0x13   :  { %199 = shalt.err (!%p196_p9)
}
  0x14   :  { %s206_s20 = smov 256   ;;  %s207_s21 = smov 16  }
  0x15   :  { %31 = dma.hbm_to_vmem [thread:$0]  %s245_s1, 1024, %s26_s15, [#allocation5], %s206_s20, %s206_s20, %s207_s21  }
  0x16   :  { %200 = dma.done.wait [#allocation3], 128  }
  0x17   :  { %201 = vsyncadd [#allocation3], 4294967168 }
  0x18   :  { %202 = dma.done.wait [#allocation5], 1024  }
  0x19   :  { %203 = vsyncadd [#allocation5], 4294966272  ;;  %v208_v0 = vmov 0.0   ;;  %v48_v1 = vld [vmem:[#allocation4 + $0x38] sm:$0xff]  ;;  %v47_v2 = vld [vmem:[#allocation4 + $0x30] sm:$0xff]  ;;  %vm61_vm0 = vcmask 261120   ;;  %v51_v10 = vlaneseq }
  0x1a   :  { %129 = vmatprep.mubr.f32.mxu0 %v208_v0  ;;  %v46_v3 = vld [vmem:[#allocation4 + $0x28] sm:$0xff]  ;;  %89 = vmatprep.subr.mxu0 %v48_v1  ;;  %v45_v4 = vld [vmem:[#allocation4 + $0x20] sm:$0xff]  ;;  %v44_v5 = vld [vmem:[#allocation4 + $0x18] sm:$0xff] }
  0x1b   :  { %90 = vmatpush1.msra.mxu0 %v47_v2  ;;  %v43_v6 = vld [vmem:[#allocation4 + $0x10] sm:$0xff]  ;;  %v42_v7 = vld [vmem:[#allocation4 + $0x8] sm:$0xff]  ;;  %v41_v8 = vld [vmem:[#allocation4] sm:$0xff]  ;;  %v52_v11 = vshrl.u32 %v51_v10, 7 }
  0x1c   :  { %91 = vmatprep.subr.mxu0 %v46_v3  ;;  %v40_v9 = vld [vmem:[#allocation2] sm:$0xff]  ;;  %v49_v13 = vld [vmem:[%s246_s2] sm:$0x3] }
  0x1d   :  { %92 = vmatpush1.msra.mxu0 %v45_v4  ;;  %v53_v12 = vsub.s32 0, %v52_v11  ;;  %v57_v14 = vsub.s32 1, %v52_v11 }
  0x1e   :  { %93 = vmatprep.subr.mxu0 %v44_v5 }
  0x1f   :  { %94 = vmatpush1.msra.mxu0 %v43_v6  ;;  %v54_v15 = vrot.slane %v49_v13, %v53_v12  ;;  %v58_v16 = vrot.slane %v49_v13, %v57_v14 }
  0x20   :  { %95 = vmatprep.subr.mxu0 %v42_v7 }
  0x21   :  { %96 = vmatpush1.msra.mxu0 %v41_v8 }
  0x22   :  { %150 = vmatmul.mubr.msk.f32.vlgmr.msra.gmra.mxu0 %vm61_vm0, %v40_v9 }
  0xe2   :  { %v131_v17 = vpop.f32.mrf.mxu0 }
  0xe3   :  { %v132_v18 = vadd.f32 %v131_v17, %v54_v15 }
  0xe4   :  { %v133_v19 = vpop.f32.mrf.mxu0 }
  0xe5   :  { %136 = vst [vmem:[%s247_s3] sm:$0xff] %v132_v18  ;;  %v134_v20 = vadd.f32 %v133_v19, %v58_v16 }
  0xe7   :  { %v137_v21 = vsub.f32 0.0, %v134_v20 }
  0xe9   :  { %v138_v22 = vmul.f32 1.442695, %v137_v21 }
  0xeb   :  { %156 = vpow2.f32 %v138_v22 }
  0xf8   :  { %v157_v23 = vpop.eup %156 }
  0xf9   :  { %v140_v24 = vadd.f32 1.0, %v157_v23 }
  0xfb   :  { %158 = vrcp.f32 %v140_v24 }
 0x108   :  { %v159_v25 = vpop.eup %158 }
 0x109   :  { %143 = vst [vmem:[%s247_s3 + $0x8] sm:$0xff] %v159_v25 }
 0x10a   :  { %148 = vsyncpa [#allocation3], 1 }
 0x10b   :  { %149 = vsyncpa [#allocation5], 1 }

</bundles_post_ra>
